<compile_context>
chip_gen: v7x
topology: tpu7x:2x2x1
jax: 0.10.0
libtpu: 0.0.40
codegen_flags: <defaults>
</compile_context>

<pallas_src>
import math
import functools

import jax
import jax.numpy as jnp
from jax import lax
from jax.experimental import pallas as pl
from jax.experimental.pallas import tpu as pltpu


# ----------------------------- tiling helper --------------------------------

def _pick_tile(dim, target, align):
    """Largest multiple of `align` that divides `dim` and is <= `target`.
    Falls back to the full dimension (always a legal Pallas block) otherwise."""
    if dim <= target:
        return dim
    best = None
    t = align
    while t <= target:
        if dim % t == 0:
            best = t
        t += align
    return best if best is not None else dim


# --------------------------- tiled linear (Conv1D) ---------------------------

def _linear_kernel(x_ref, w_ref, b_ref, o_ref, acc_ref):
    # grid = (M//tm, N//tn, K//tk); K (axis 2) is the sequential reduction axis.
    @pl.when(pl.program_id(2) == 0)
    def _init():
        acc_ref[...] = jnp.zeros(acc_ref.shape, acc_ref.dtype)

    # bf16 MXU operands, f32 accumulation (fast path on v5e/v6e/v7x MXUs).
    acc_ref[...] += jnp.dot(x_ref[...].astype(jnp.bfloat16),
                            w_ref[...].astype(jnp.bfloat16),
                            preferred_element_type=jnp.float32)

    @pl.when(pl.program_id(2) == pl.num_programs(2) - 1)
    def _finalize():
        # bias added exactly once per output tile (not per K step)
        o_ref[...] = (acc_ref[...] + b_ref[...]).astype(o_ref.dtype)


def _pallas_linear(x2d, w, b, *, tm=512, tn=512, tk=512):
    """y = x @ W + b  (GPT-2 Conv1D convention: W is (in, out))."""
    M, K = x2d.shape
    Kw, N = w.shape
    assert K == Kw
    tm = _pick_tile(M, tm, 8)      # sublane-aligned
    tn = _pick_tile(N, tn, 128)    # lane-aligned
    tk = _pick_tile(K, tk, 128)
    assert M % tm == 0 and N % tn == 0 and K % tk == 0
    grid = (M // tm, N // tn, K // tk)

    cost = pl.CostEstimate(flops=2 * M * N * K, transcendentals=0,
                           bytes_accessed=4 * (M * K + K * N + M * N + N))

    return pl.pallas_call(
        _linear_kernel,
        out_shape=jax.ShapeDtypeStruct((M, N), x2d.dtype),
        grid_spec=pltpu.PrefetchScalarGridSpec(
            num_scalar_prefetch=0,
            grid=grid,
            in_specs=[
                pl.BlockSpec((tm, tk), lambda i, j, k: (i, k)),
                pl.BlockSpec((tk, tn), lambda i, j, k: (k, j)),
                pl.BlockSpec((1, tn), lambda i, j, k: (0, j)),
            ],
            out_specs=pl.BlockSpec((tm, tn), lambda i, j, k: (i, j)),
            scratch_shapes=[pltpu.VMEM((tm, tn), jnp.float32)],
        ),
        compiler_params=pltpu.CompilerParams(
            dimension_semantics=("parallel", "parallel", "arbitrary"),
            vmem_limit_bytes=32 * 1024 * 1024),
        cost_estimate=cost,
    )(x2d, w, b.reshape(1, N))


# --------------------------- flash causal attention ---------------------------

def _flash_attn_kernel(qi_tab_ref, ki_tab_ref, q_ref, k_ref, v_ref, o_ref,
                       m_ref, l_ref, acc_ref,
                       *, num_heads, head_dim, sm_scale, mask_value):
    # grid = (B, num_tri); the second axis walks the lower-triangular (qi, ki<=qi)
    # schedule via the two scalar-prefetched int32 tables (no dead kv steps).
    t = pl.program_id(1)
    qi = qi_tab_ref[t]
    ki = ki_tab_ref[t]

    @pl.when(ki == 0)
    def _init():
        m_ref[...] = jnp.full(m_ref.shape, -jnp.inf, dtype=m_ref.dtype)
        l_ref[...] = jnp.zeros(l_ref.shape, l_ref.dtype)
        acc_ref[...] = jnp.zeros(acc_ref.shape, acc_ref.dtype)

    def process(masked):
        # Hoisted, lane-dense passes: scale q once, cast MXU operands to bf16 once.
        q_bf = (q_ref[0] * sm_scale).astype(jnp.bfloat16)   # (tq, E)
        k_bf = k_ref[0].astype(jnp.bfloat16)                 # (tkv, E)
        v_bf = v_ref[0].astype(jnp.bfloat16)                 # (tkv, E)
        tq = q_bf.shape[0]
        tkv = k_bf.shape[0]
        if masked:
            # diagonal tile only (tq == tkv and qi == ki) -> local lower triangle
            row = lax.broadcasted_iota(jnp.int32, (tq, tkv), 0)
            col = lax.broadcasted_iota(jnp.int32, (tq, tkv), 1)
            keep = col <= row

        m_prev_all = m_ref[...]          # (tq, H) lane-packed stats, dense load
        l_prev_all = l_ref[...]
        alpha_parts = []
        pv_parts = []
        for h in range(num_heads):
            sl = slice(h * head_dim, (h + 1) * head_dim)
            # contract D of both operands: K transpose folded into the MXU
            s = lax.dot_general(q_bf[:, sl], k_bf[:, sl],
                                (((1,), (1,)), ((), ())),
                                preferred_element_type=jnp.float32)
            if masked:
                s = jnp.where(keep, s, mask_value)
            m_prev = m_prev_all[:, h:h + 1]                       # (tq, 1)
            m_new = jnp.maximum(m_prev, jnp.max(s, axis=-1, keepdims=True))
            alpha = jnp.exp(m_prev - m_new)                       # f32 (VPU/EUP)
            p = jnp.exp(s - m_new)                                # f32
            m_ref[:, h:h + 1] = m_new
            l_ref[:, h:h + 1] = (alpha * l_prev_all[:, h:h + 1]
                                 + jnp.sum(p, axis=-1, keepdims=True))
            alpha_parts.append(jnp.broadcast_to(alpha, (tq, head_dim)))
            pv_parts.append(jnp.dot(p.astype(jnp.bfloat16), v_bf[:, sl],
                                    preferred_element_type=jnp.float32))
        # Single lane-dense accumulator pass per kv step (one load + one store).
        alpha_full = jnp.concatenate(alpha_parts, axis=1)         # (tq, E)
        pv_full = jnp.concatenate(pv_parts, axis=1)               # (tq, E)
        acc_ref[...] = alpha_full * acc_ref[...] + pv_full

    # Off-diagonal causal-visible kv tiles: no mask needed (ki < qi by schedule).
    @pl.when(ki < qi)
    def _off_diag():
        process(masked=False)

    # Diagonal kv tile: apply local causal mask, then normalize and emit output.
    @pl.when(ki == qi)
    def _diag_and_emit():
        process(masked=True)
        tq = acc_ref.shape[0]
        inv_all = pl.reciprocal(l_ref[...], approx=False)         # (tq, H), exact
        inv_full = jnp.concatenate(
            [jnp.broadcast_to(inv_all[:, h:h + 1], (tq, head_dim))
             for h in range(num_heads)], axis=1)                  # (tq, E)
        # single lane-dense store of the merged-head (tq, E) tile
        o_ref[0] = (acc_ref[...] * inv_full).astype(o_ref.dtype)


def _pallas_flash_attention(qkv, *, num_heads, embed_dim, t_target=128):
    """qkv: (B, S, 3E) fused c_attn output. Returns merged-head (B, S, E)."""
    B, S, three_e = qkv.shape
    E = embed_dim
    assert three_e == 3 * E and E % num_heads == 0
    D = E // num_heads
    T = _pick_tile(S, t_target, 8)       # tq == tkv
    assert S % T == 0                    # ragged S would need a cdiv + masked-edge path
    num_t = S // T
    sm_scale = 1.0 / math.sqrt(D)
    mask_value = float(jnp.finfo(jnp.float32).min)

    # Triangular (qi, ki <= qi) schedule: removes the ~num_t^2/2 fully-masked grid
    # steps entirely. ki is always the last step of a row at ki == qi (emit point).
    qi_list, ki_list = [], []
    for q_i in range(num_t):
        for k_i in range(q_i + 1):
            qi_list.append(q_i)
            ki_list.append(k_i)
    qi_tab = jnp.asarray(qi_list, dtype=jnp.int32)
    ki_tab = jnp.asarray(ki_list, dtype=jnp.int32)
    num_tri = len(qi_list)

    kernel = functools.partial(
        _flash_attn_kernel, num_heads=num_heads, head_dim=D,
        sm_scale=sm_scale, mask_value=mask_value)

    if E % 128 == 0:
        # Fused path: read q/k/v column blocks straight out of the (B, S, 3E) qkv.
        # No (B,S,E) split copies ever touch HBM.
        q_spec = pl.BlockSpec((1, T, E), lambda b, t, qt, kt: (b, qt[t], 0))
        k_spec = pl.BlockSpec((1, T, E), lambda b, t, qt, kt: (b, kt[t], 1))
        v_spec = pl.BlockSpec((1, T, E), lambda b, t, qt, kt: (b, kt[t], 2))
        operands = (qkv, qkv, qkv)
    else:
        # Fallback: an E-wide lane block of a 3E array would violate the 128-lane
        # block constraint, so split into three full-width arrays first.
        q, k, v = jnp.split(qkv, 3, axis=2)
        q_spec = pl.BlockSpec((1, T, E), lambda b, t, qt, kt: (b, qt[t], 0))
        k_spec = pl.BlockSpec((1, T, E), lambda b, t, qt, kt: (b, kt[t], 0))
        v_spec = pl.BlockSpec((1, T, E), lambda b, t, qt, kt: (b, kt[t], 0))
        operands = (q, k, v)

    o_spec = pl.BlockSpec((1, T, E), lambda b, t, qt, kt: (b, qt[t], 0))

    cost = pl.CostEstimate(
        flops=2 * B * S * S * E,                       # ~causal-halved QK^T + PV
        transcendentals=B * num_heads * S * S // 2,
        bytes_accessed=4 * B * S * (3 * E + E))

    # NOTE: on v5e, if xprof shows exposed KV DMA, add pipeline_mode=pl.Buffered(3)
    # on k_spec / v_spec (cheap VMEM, hides fetch latency across row transitions).
    return pl.pallas_call(
        kernel,
        out_shape=jax.ShapeDtypeStruct((B, S, E), qkv.dtype),
        grid_spec=pltpu.PrefetchScalarGridSpec(
            num_scalar_prefetch=2,
            grid=(B, num_tri),
            in_specs=[q_spec, k_spec, v_spec],
            out_specs=o_spec,
            scratch_shapes=[
                pltpu.VMEM((T, num_heads), jnp.float32),   # running max m (lane-packed)
                pltpu.VMEM((T, num_heads), jnp.float32),   # running sum l (lane-packed)
                pltpu.VMEM((T, E), jnp.float32),           # output accumulator
            ],
        ),
        compiler_params=pltpu.CompilerParams(
            dimension_semantics=("parallel", "arbitrary"),
            vmem_limit_bytes=32 * 1024 * 1024),
        cost_estimate=cost,
    )(qi_tab, ki_tab, *operands)


# ------------------------------ module forward -------------------------------

def custom_gpt2_attention_forward(hidden_states, params, num_heads):
    """CustomGPT2Attention.forward (use_cache=False, eval-mode dropouts)."""
    B, S, E = hidden_states.shape

    # c_attn: (B*S, E) @ (E, 3E) + b -> fused qkv stays a single HBM array
    qkv = _pallas_linear(hidden_states.reshape(B * S, E),
                         params["w_attn"], params["b_attn"]).reshape(B, S, 3 * E)

    # Per-head split/merge ((0,2,1,3) transposes) happens inside the attention
    # kernel via lane slices; the qkv q/k/v split is done by column-block BlockSpecs.
    attn_out = _pallas_flash_attention(qkv, num_heads=num_heads, embed_dim=E)

    # c_proj: (B*S, E) @ (E, E) + b ; resid_dropout is identity in eval
    out = _pallas_linear(attn_out.reshape(B * S, E),
                         params["w_proj"], params["b_proj"]).reshape(B, S, E)
    # TODO(synk): use_cache=True KV-cache allocate/update/concat path is stateful and
    # host-managed in the PyTorch module; only the stateless forward is kernelized.
    return out


# ----------------------------- reference (jnp) --------------------------------

def _reference_forward(hidden_states, params, num_heads):
    B, S, E = hidden_states.shape
    H = num_heads
    D = E // H
    qkv = hidden_states @ params["w_attn"] + params["b_attn"]
    q, k, v = jnp.split(qkv, 3, axis=2)
    q = q.reshape(B, S, H, D).transpose(0, 2, 1, 3)
    k = k.reshape(B, S, H, D).transpose(0, 2, 1, 3)
    v = v.reshape(B, S, H, D).transpose(0, 2, 1, 3)
    s = jnp.einsum("bhqd,bhkd->bhqk", q, k) / math.sqrt(D)
    causal = jnp.tril(jnp.ones((S, S), dtype=bool))
    s = jnp.where(causal[None, None], s, jnp.finfo(s.dtype).min)
    p = jax.nn.softmax(s, axis=-1)
    o = jnp.einsum("bhqk,bhkd->bhqd", p, v)
    o = o.transpose(0, 2, 1, 3).reshape(B, S, E)
    return o @ params["w_proj"] + params["b_proj"]


# --------------------------------- main ---------------------------------------

if __name__ == "__main__":
    # batch=2, seq=8, embed_dim=512, heads=4 (head_dim=128).
    # E is a multiple of 128 so the fused-qkv column-block path and lane-aligned
    # per-head slices/concats are exercised.
    B, S, E, H = 2, 8, 512, 4

    key = jax.random.PRNGKey(0)
    k_x, k_wa, k_ba, k_wp, k_bp = jax.random.split(key, 5)

    hidden_states = jax.random.normal(k_x, (B, S, E), dtype=jnp.float32)
    params = {
        "w_attn": 0.02 * jax.random.normal(k_wa, (E, 3 * E), dtype=jnp.float32),
        "b_attn": 0.02 * jax.random.normal(k_ba, (3 * E,), dtype=jnp.float32),
        "w_proj": 0.02 * jax.random.normal(k_wp, (E, E), dtype=jnp.float32),
        "b_proj": 0.02 * jax.random.normal(k_bp, (E,), dtype=jnp.float32),
    }

    out = custom_gpt2_attention_forward(hidden_states, params, H)
    out = jax.block_until_ready(out)

    ref = _reference_forward(hidden_states, params, H)
    assert out.shape == (B, S, E)
    # bf16 MXU inputs (with f32 accumulation) vs an all-f32 reference -> relaxed tol
    max_err = float(jnp.max(jnp.abs(out - ref)))
    assert jnp.allclose(out, ref, atol=2e-3, rtol=2e-2), f"mismatch vs reference: {max_err}"

    print("KERNEL_OK")
</pallas_src>

<mosaic_0001>
module attributes {stable_mosaic.version = 11 : i64} {
  func.func @_linear_kernel(%arg0: i32, %arg1: i32, %arg2: i32, %arg3: memref<16x512xf32, #tpu.memory_space<vmem>>, %arg4: memref<512x512xf32, #tpu.memory_space<vmem>>, %arg5: memref<1x512xf32, #tpu.memory_space<vmem>>, %arg6: memref<16x512xf32, #tpu.memory_space<vmem>>, %arg7: memref<16x512xf32, #tpu.memory_space<vmem>>) attributes {dimension_semantics = [#tpu.dimension_semantics<parallel>, #tpu.dimension_semantics<parallel>, #tpu.dimension_semantics<arbitrary>], iteration_bounds = array<i64: 1, 3, 1>, scalar_prefetch = 0 : i64, scratch_operands = 1 : i64, tpu.core_type = #tpu.core_type<tc>, window_params = [{transform_indices = @transform_0, window_bounds = array<i64: 16, 512>}, {transform_indices = @transform_1, window_bounds = array<i64: 512, 512>}, {transform_indices = @transform_2, window_bounds = array<i64: 1, 512>}, {transform_indices = @transform_3, window_bounds = array<i64: 16, 512>}]} {
    %c0_i32 = arith.constant 0 : i32
    %0 = arith.cmpi eq, %arg2, %c0_i32 : i32
    %1 = arith.extui %0 : i1 to i32
    %c0_i32_0 = arith.constant 0 : i32
    %2 = arith.cmpi ne, %1, %c0_i32_0 : i32
    scf.if %2 {
      %cst_10 = arith.constant 0.000000e+00 : f32
      %14 = vector.broadcast %cst_10 : f32 to vector<16x512xf32>
      %c0_11 = arith.constant 0 : index
      %c0_12 = arith.constant 0 : index
      %15 = vector.load %arg7[%c0_11, %c0_12] : memref<16x512xf32, #tpu.memory_space<vmem>>, vector<16x512xf32>
      tpu.vector_store %arg7[%c0_11, %c0_12], %14 {strides = array<i32>} : memref<16x512xf32, #tpu.memory_space<vmem>>, vector<16x512xf32>,
    } else {
    }
    %c0 = arith.constant 0 : index
    %c0_1 = arith.constant 0 : index
    %3 = vector.load %arg7[%c0, %c0_1] : memref<16x512xf32, #tpu.memory_space<vmem>>, vector<16x512xf32>
    %c0_2 = arith.constant 0 : index
    %c0_3 = arith.constant 0 : index
    %4 = vector.load %arg3[%c0_2, %c0_3] : memref<16x512xf32, #tpu.memory_space<vmem>>, vector<16x512xf32>
    %5 = arith.truncf %4 : vector<16x512xf32> to vector<16x512xbf16>
    %c0_4 = arith.constant 0 : index
    %c0_5 = arith.constant 0 : index
    %6 = vector.load %arg4[%c0_4, %c0_5] : memref<512x512xf32, #tpu.memory_space<vmem>>, vector<512x512xf32>
    %7 = arith.truncf %6 : vector<512x512xf32> to vector<512x512xbf16>
    %cst = arith.constant dense<0.000000e+00> : vector<16x512xf32>
    %8 = tpu.matmul %5, %7, %cst {dimension_numbers = #tpu.dot_dimension_numbers<[1], [0], [0], [1], [0, 0, 1, 1], [], []>} : vector<16x512xbf16>, vector<512x512xbf16>, vector<16x512xf32> -> vector<16x512xf32>
    %9 = arith.addf %3, %8 : vector<16x512xf32>
    %c0_6 = arith.constant 0 : index
    %c0_7 = arith.constant 0 : index
    %10 = vector.load %arg7[%c0_6, %c0_7] : memref<16x512xf32, #tpu.memory_space<vmem>>, vector<16x512xf32>
    tpu.vector_store %arg7[%c0_6, %c0_7], %9 {strides = array<i32>} : memref<16x512xf32, #tpu.memory_space<vmem>>, vector<16x512xf32>,
    %c0_i32_8 = arith.constant 0 : i32
    %11 = arith.cmpi eq, %arg2, %c0_i32_8 : i32
    %12 = arith.extui %11 : i1 to i32
    %c0_i32_9 = arith.constant 0 : i32
    %13 = arith.cmpi ne, %12, %c0_i32_9 : i32
    scf.if %13 {
      %c0_10 = arith.constant 0 : index
      %c0_11 = arith.constant 0 : index
      %14 = vector.load %arg7[%c0_10, %c0_11] : memref<16x512xf32, #tpu.memory_space<vmem>>, vector<16x512xf32>
      %c0_12 = arith.constant 0 : index
      %c0_13 = arith.constant 0 : index
      %15 = vector.load %arg5[%c0_12, %c0_13] : memref<1x512xf32, #tpu.memory_space<vmem>>, vector<1x512xf32>
      %16 = vector.broadcast %15 : vector<1x512xf32> to vector<16x512xf32>
      %17 = arith.addf %14, %16 : vector<16x512xf32>
      %c0_14 = arith.constant 0 : index
      %c0_15 = arith.constant 0 : index
      %18 = vector.load %arg6[%c0_14, %c0_15] : memref<16x512xf32, #tpu.memory_space<vmem>>, vector<16x512xf32>
      tpu.vector_store %arg6[%c0_14, %c0_15], %17 {strides = array<i32>} : memref<16x512xf32, #tpu.memory_space<vmem>>, vector<16x512xf32>,
    } else {
    }
    return
  }
  func.func @transform_0(%arg0: i32, %arg1: i32, %arg2: i32) -> (i32, i32) {
    %c0_i32 = arith.constant 0 : i32
    return %arg0, %arg2 : i32, i32
  }
  func.func @transform_1(%arg0: i32, %arg1: i32, %arg2: i32) -> (i32, i32) {
    %c0_i32 = arith.constant 0 : i32
    return %arg2, %arg1 : i32, i32
  }
  func.func @transform_2(%arg0: i32, %arg1: i32, %arg2: i32) -> (i32, i32) {
    %c0_i32 = arith.constant 0 : i32
    %c0_i32_0 = arith.constant 0 : i32
    return %c0_i32, %arg1 : i32, i32
  }
  func.func @transform_3(%arg0: i32, %arg1: i32, %arg2: i32) -> (i32, i32) {
    %c0_i32 = arith.constant 0 : i32
    return %arg0, %arg1 : i32, i32
  }
}

</mosaic_0001>

<bundles_post_ra>
// kernel: tpu_custom_call.1
= control target key start
LH: loop header
LB: loop body
LE: loop exit
PB: predicated region body
PF: predicated region fallthrough
CT: control target
= control target key end

     0   :  { %s1924_s0 = inlined_call_operand.hbm [shape: f32[16,512], index: 0, kind: input, shape index: {}]   ;;  %s1925_s1 = inlined_call_operand.hbm [shape: f32[512,1536], index: 1, kind: input, shape index: {}]   ;;  %s1926_s2 = inlined_call_operand.hbm [shape: f32[1,1536], index: 2, kind: input, shape index: {}]   ;;  %s1927_s3 = inlined_call_operand.hbm [shape: f32[16,1536], index: 3, kind: output, shape index: {}]  }
   0x1   :  { %1935 = sst [smem:[#allocation13_spill]] %s1925_s1 }
   0x2   :  { %8 = vsyncpa [#allocation4], 0 }
   0x3   :  { %9 = vsyncpa [#allocation7], 0 }
   0x4   :  { %11 = vsyncpa [#allocation7 + $0x1], 0 }
   0x5   :  { %12 = vsyncpa [#allocation5], 0 }
   0x6   :  { %14 = vsyncpa [#allocation5 + $0x1], 0  ;;  %s1404_s12 = smov 0   ;;  %s1406_s13 = smov 0  }
   0x7   :  { %s1408_s14 = smov 0   ;;  %s1410_s15 = smov 0  }
   0x8   :  { %s1412_s16 = smov 0   ;;  %s1414_s17 = smov 0  }
   0x9 LB: > { %s35_s18 = sadd.s32 1, %s1368_s16  ;;  %s76_s19 = sadd.s32 1, %s1360_s14  ;;  %s1372_s17 = sphi %s1414_s17, %s20_s17   ;;  %s1368_s16 = sphi %s1412_s16, %s1957_s16   ;;  %s1364_s15 = sphi %s1410_s15, %s1956_s15   ;;  %s1360_s14 = sphi %s1408_s14, %s1955_s14   ;;  %s1356_s13 = sphi %s1406_s13, %s1954_s13   ;;  %s1352_s12 = sphi %s1404_s12, %s1953_s12  }
   0xa   : > { %p37_p0 = scmp.ge.s32.totalorder %s35_s18, 3  ;;  %p83_p1 = scmp.ne.s32.totalorder %s1360_s14, %s1356_s13 }
   0xb   : > { %p84_p2 = scmp.eq.s32.totalorder %s1372_s17, 0  ;;  %p1140_p5 = scmp.lt.s32.totalorder %s1372_s17, 3 }
   0xc   : > { %s1959_s18 = smov (%p37_p0, %s35_s18), 0  ;;  %s186_s22 = sand.u32 1, %s1372_s17  }
   0xd   : > { %p1444_p3 = por %p84_p2, %p83_p1  ;;  %s72_s21 = ssub.s32 %s1368_s16, %s1959_s18 }
   0xe   : > { %p74_p4 = scmp.eq.s32.totalorder %s72_s21, 0  ;;  %s188_s23 = sand.u32 1, %s1360_s14  }
   0xf   : > { %s1087_s25 = sshll.u32 %s188_s23, 11  ;;  %s1103_s26 = sshll.u32 %s1368_s16, 9 }
  0x10   : > { %s1454_s24 = scalar_select %p74_p4, %s1360_s14, %s76_s19  }
  0x11   : > { %s1937_s1 = sld [smem:[#allocation13_spill]]  ;;  %s190_s30 = scalar_lea.vmem [#allocation6], %s1087_s25 }
  0x12   : > { %s200_s4 = sshll.u32 %s190_s30, 4  ;;  %p1468_p6 = pnand %p1140_p5, %p1444_p3  ;;  %s1464_s4 = int_to_ptr.vmem [resolvable:$true] %s200_s4 }
  0x13   : > { %s1472_s6 = scalar_lea.sflag [#allocation7], %s186_s22 }
  0x14   : > { %p1200_p8 = pneg %p1468_p6 }
  0x17   : > { %s1462_s29 = scalar_lea.hbm %s1937_s1, %s1103_s26  ;;  %s1203_s10 = scalar_lea.hbm %s1937_s1, 98304 }
  0x18   : > { %s1198_s7 = scalar_lea.hbm %s1462_s29, 32768  ;;  %p1204_p11 = scmp.lt.u32.totalorder %s1462_s29, %s1937_s1 }
  0x19   : > { %p1199_p7 = scmp.ne.s32.totalorder %s1462_s29, %s1198_s7  ;;  %p1205_p12 = scmp.lt.u32.totalorder %s1203_s10, %s1198_s7 }
  0x1a   : > { %p1207_p0 = scmp.lt.u32.totalorder %s1198_s7, %s1462_s29 }
  0x1b   : > { %p1201_p9 = pnand %p1200_p8, %p1199_p7  ;;  %p1206_p13 = por %p1205_p12, %p1204_p11 }
  0x1d   : > { %p1202_p10 = pneg %p1201_p9  ;;  %p1208_p2 = por %p1207_p0, %p1206_p13 }
  0x1f   : > { %p1209_p3 = pnand %p1208_p2, %p1202_p10 }
  0x21   : > { %1212 = shalt.err (!%p1209_p3)
}
  0x22   : > { %s1213_s20 = scalar_lea.vmem %s1464_s4, 32768  ;;  %s1374_s21 = smov [#allocation6]  }
  0x23   : > { %p1214_p4 = scmp.ne.s32.totalorder %s1464_s4, %s1213_s20  ;;  %s1218_s22 = sshll.u32 %s1374_s21, 4  ;;  %s1219_s22 = int_to_ptr.vmem [resolvable:$false] %s1218_s22 }
  0x24   : > { %s1220_s25 = scalar_lea.vmem %s1219_s22, 65536  ;;  %p1221_p9 = scmp.lt.s32.totalorder %s1464_s4, %s1219_s22 }
  0x25   : > { %p1216_p5 = pnand %p1214_p4, %p1200_p8  ;;  %p1222_p11 = scmp.lt.s32.totalorder %s1220_s25, %s1213_s20 }
  0x27   : > { %p1217_p7 = pneg %p1216_p5  ;;  %p1223_p12 = por %p1222_p11, %p1221_p9 }
  0x29   : > { %p1224_p13 = pnand %p1223_p12, %p1217_p7 }
  0x2b   : > { %1227 = shalt.err (!%p1224_p13)
}
  0x2c   : > { %s1375_s26 = smov 1536   ;;  %s1928_s27 = smov 512  }
  0x2d   : > { %s1929_s28 = smov 32   ;;  %s1503_s30 = sadd.s32 4294967295, %s1372_s17  }
  0x2e   : > { %1131 = dma.hbm_to_vmem [thread:$0]  (!%p1468_p6), %s1462_s29, 32768, %s1464_s4, %s1472_s6, %s1375_s26, %s1928_s27, %s1929_s28  }
  0x2f   : > { %s1083_s7 = sadd.s32 4294967294, %s1372_s17   ;;  %p89_p10 = scmp.ne.s32.totalorder %s1356_s13, %s1352_s12 }
  0x30   : > { %p1930_p0 = scmp.eq.s32.totalorder %s1503_s30, 0  ;;  %p141_p2 = scmp.eq.s32.totalorder %s1503_s30, 2 }
  0x31   : > { %p147_p3 = scmp.eq.s32.totalorder %s1083_s7, 2  ;;  %p1084_p5 = scmp.ge.s32.totalorder %s1372_s17, 1 }
  0x32   : > { %p1512_p4 = por %p1930_p0, %p89_p10  ;;  %p1520_p7 = por %p141_p2, %p83_p1 }
  0x33   : > { %p1524_p9 = por %p147_p3, %p89_p10  ;;  %p154_p11 = scmp.lt.s32.totalorder %s1372_s17, 4 }
  0x34   : > { %s1939_s8 = scalar_select %p1512_p4, 1, 0 }
  0x35   : > { %s1940_s29 = scalar_select %p1520_p7, 1, 0 }
  0x36   : > { %s1941_s4 = scalar_select %p1524_p9, 1, 0 }
  0x37   : > { %s1090_s9 = sshll.u32 %s188_s23, 2  ;;  %p1531_p12 = pnand %p1084_p5, %p154_p11 }
  0x38   : > { %s1378_s11 = smov [#allocation3]   ;;  %s1104_s20 = sshll.u32 %s1368_s16, 6 }
  0x39   : > { %s1942_s10 = scalar_select %p1531_p12, 1, 0 }
  0x3a   : > { %s172_s19 = sshll.u32 %s1378_s11, 4  ;;  %p1124_p1 = pneg %p1531_p12  ;;  %s1535_s19 = int_to_ptr.vmem [resolvable:$true] %s172_s19 }
  0x3b   : > { %s1543_s25 = scalar_lea.hbm %s1926_s2, %s1104_s20  ;;  %s214_s23 = scalar_lea.vmem [#allocation8], %s1090_s9 }
  0x3c   : > { %s222_s26 = sshll.u32 %s214_s23, 4  ;;  %p1547_p13 = pnand %p1124_p1, %p1930_p0  ;;  %s223_s26 = int_to_ptr.vmem [resolvable:$true] %s222_s26 }
  0x3d   : > { %s1228_s11 = scalar_lea.hbm %s1543_s25, 64  ;;  %s1233_s22 = scalar_lea.hbm %s1926_s2, 192 }
  0x3e   : > { %s1943_s7 = scalar_select %p1547_p13, 1, 0 }
  0x3f   : > { %p1229_p10 = scmp.ne.s32.totalorder %s1543_s25, %s1228_s11  ;;  %p1234_p5 = scmp.lt.u32.totalorder %s1543_s25, %s1926_s2 }
  0x40   : > { %p1235_p11 = scmp.lt.u32.totalorder %s1233_s22, %s1228_s11  ;;  %p1237_p0 = scmp.lt.u32.totalorder %s1228_s11, %s1543_s25 }
  0x41   : > { %p1231_p2 = pnand %p1229_p10, %p1200_p8 }
  0x42   : > { %p1236_p1 = por %p1235_p11, %p1234_p5 }
  0x43   : > { %p1232_p3 = pneg %p1231_p2 }
  0x44   : > { %p1238_p9 = por %p1237_p0, %p1236_p1 }
  0x46   : > { %p1239_p7 = pnand %p1238_p9, %p1232_p3 }
  0x48   : > { %1242 = shalt.err (!%p1239_p7)
}
  0x49   : > { %s1243_s9 = scalar_lea.vmem %s223_s26, 64  ;;  %s1379_s23 = smov [#allocation8]  }
  0x4a   : > { %p1244_p4 = scmp.ne.s32.totalorder %s223_s26, %s1243_s9  ;;  %s1248_s20 = sshll.u32 %s1379_s23, 4  ;;  %s1249_s20 = int_to_ptr.vmem [resolvable:$false] %s1248_s20 }
  0x4b   : > { %s1250_s21 = scalar_lea.vmem %s1249_s20, 128  ;;  %p1251_p12 = scmp.lt.s32.totalorder %s223_s26, %s1249_s20 }
  0x4c   : > { %p1246_p10 = pnand %p1244_p4, %p1200_p8  ;;  %p1252_p13 = scmp.lt.s32.totalorder %s1250_s21, %s1243_s9 }
  0x4e   : > { %p1247_p2 = pneg %p1246_p10  ;;  %p1253_p5 = por %p1252_p13, %p1251_p12 }
  0x50   : > { %p1254_p11 = pnand %p1253_p5, %p1247_p2 }
  0x52   : > { %1257 = shalt.err (!%p1254_p11)
}
  0x53   : > { %1134 = dma.hbm_to_vmem [thread:$0]  (!%p1468_p6), %s1543_s25, 64, %s223_s26, %s1472_s6  }
  0x54   : > { %s1258_s11 = scalar_lea.hbm %s1924_s0, 1024  ;;  %p1944_p0 = scmp.ne.s32.totalorder %s1943_s7, 0 }
  0x55   : > { %p1259_p8 = scmp.ne.s32.totalorder %s1924_s0, %s1258_s11  ;;  %p1265_p12 = scmp.lt.u32.totalorder %s1258_s11, %s1924_s0 }
  0x56   : > { %p1260_p4 = pneg %p1944_p0 }
  0x58   : > { %p1261_p7 = pnand %p1260_p4, %p1259_p8 }
  0x5a   : > { %p1262_p9 = pneg %p1261_p7 }
  0x5c   : > { %p1267_p13 = pnand %p1265_p12, %p1262_p9 }
  0x5e   : > { %1270 = shalt.err (!%p1267_p13)
}
  0x5f   : > { %s1271_s5 = scalar_lea.vmem %s1535_s19, 1024  ;;  %p1279_p10 = scmp.lt.s32.totalorder %s1535_s19, %s1535_s19 }
  0x60   : > { %p1272_p6 = scmp.ne.s32.totalorder %s1535_s19, %s1271_s5  ;;  %p1280_p2 = scmp.lt.s32.totalorder %s1271_s5, %s1271_s5 }
  0x62   : > { %p1274_p3 = pnand %p1272_p6, %p1260_p4  ;;  %p1281_p5 = por %p1280_p2, %p1279_p10 }
  0x64   : > { %p1275_p1 = pneg %p1274_p3 }
  0x66   : > { %p1282_p11 = pnand %p1281_p5, %p1275_p1 }
  0x68   : > { %1285 = shalt.err (!%p1282_p11)
}
  0x69   : > { %s1945_s1 = smov 32   ;;  %s1946_s6 = smov 512  }
  0x6a   : > { %1127 = dma.hbm_to_vmem [thread:$0]  (!%p1944_p0), %s1924_s0, 1024, %s1535_s19, [#allocation4], %s1946_s6, %s1946_s6, %s1945_s1  }
  0x6b   : > { %p1947_p8 = scmp.ne.s32.totalorder %s1942_s10, 0 }
  0x6c   : > { %p1948_p4 = scmp.eq.s32.totalorder (!%p1947_p8), %s1503_s30, 0 }
  0x6d   : > { %231 = sbr.rel (%p1947_p8) target bundleno = 488 (0x1e8), region = 32 }
  0x74   : > { %1339 = dma.done.wait (%p1948_p4), [#allocation4], 1024   ;;  %p1949_p7 = pmov %p1948_p4 }
  0x75   : > { %s237_s7 = sand.u32 1, %s1503_s30   ;;  %s1603_s20 = sand.u32 1, %s1356_s13  }
  0x76   : > { %1341 = vsyncadd (%p1949_p7), [#allocation4], 4294966272  ;;  %s1095_s21 = sshll.u32 %s1603_s20, 11  ;;  %s238_s27 = scalar_lea.sflag [#allocation7], %s237_s7 }
  0x77   : > { %s1606_s28 = scalar_lea.vmem [#allocation6], %s1095_s21  ;;  %p1950_p0 = scmp.ne.s32.totalorder %s1939_s8, 0 }
  0x79   : > { %1343 = dma.done.wait (%p1950_p0), %s238_s27, 32832  }
  0x7a   : > { %1345 = vsyncadd (%p1950_p0), %s238_s27, 4294934464  ;;  %v318_v0 = vld [vmem:[%s1606_s28 + $0x8] sm:$0xff]  ;;  %v320_v2 = vld [vmem:[%s1606_s28 + $0x18] sm:$0xff]  ;;  %s1096_s30 = sshll.u32 %s1603_s20, 2  ;;  %s1097_s10 = sshll.u32 %s1603_s20, 6 }
  0x7b   : > { %v322_v1 = vld [vmem:[%s1606_s28 + $0x28] sm:$0xff]  ;;  %v324_v4 = vld [vmem:[%s1606_s28 + $0x38] sm:$0xff]  ;;  %v317_v5 = vld [vmem:[%s1606_s28] sm:$0xff]  ;;  %s250_s8 = scalar_lea.vmem [#allocation8], %s1096_s30  ;;  %s277_s19 = scalar_lea.vmem [#allocation9], %s1097_s10 }
  0x7c   : > { %v574_v3 = vpack.c.bf16 %v322_v1, %v318_v0  ;;  %v321_v6 = vld [vmem:[%s1606_s28 + $0x20] sm:$0xff]  ;;  %v576_v7 = vpack.c.bf16 %v324_v4, %v320_v2  ;;  %v319_v9 = vld [vmem:[%s1606_s28 + $0x10] sm:$0xff]  ;;  %v326_v11 = vld [vmem:[%s1606_s28 + $0x48] sm:$0xff]  ;;  %s955_s11 = sshll.u32 %s277_s19, 4  ;;  %s1105_s22 = sshll.u32 %s1364_s15, 9  ;;  %s1871_s11 = int_to_ptr.vmem [resolvable:$true] %s955_s11 }
  0x7d   : > { %v573_v8 = vpack.c.bf16 %v321_v6, %v317_v5  ;;  %v323_v10 = vld [vmem:[%s1606_s28 + $0x30] sm:$0xff]  ;;  %v330_v13 = vld [vmem:[%s1606_s28 + $0x68] sm:$0xff]  ;;  %v328_v14 = vld [vmem:[%s1606_s28 + $0x58] sm:$0xff]  ;;  %s1876_s23 = scalar_lea.hbm %s1927_s3, %s1105_s22  ;;  %s939_s5 = scalar_lea.sflag [#allocation5], %s1603_s20 }
  0x7e   : > { %701 = vmatprep.subr.bf16.mxu0 %v574_v3  ;;  %v575_v12 = vpack.c.bf16 %v323_v10, %v319_v9  ;;  %v332_v15 = vld [vmem:[%s1606_s28 + $0x78] sm:$0xff]  ;;  %787 = vmatprep.subr.bf16.mxu1 %v576_v7  ;;  %v578_v16 = vpack.c.bf16 %v330_v13, %v326_v11  ;;  %v325_v18 = vld [vmem:[%s1606_s28 + $0x40] sm:$0xff]  ;;  %v327_v20 = vld [vmem:[%s1606_s28 + $0x50] sm:$0xff]  ;;  %s1286_s1 = scalar_lea.vmem %s1871_s11, 1024  ;;  %p1951_p12 = scmp.ne.s32.totalorder %s1940_s29, 0 }
  0x7f   : > { %702 = vmatpush1.bf16.msra.mxu0 %v573_v8  ;;  %v580_v17 = vpack.c.bf16 %v332_v15, %v328_v14  ;;  %v329_v19 = vld [vmem:[%s1606_s28 + $0x60] sm:$0xff]  ;;  %v331_v22 = vld [vmem:[%s1606_s28 + $0x70] sm:$0xff]  ;;  %v334_v23 = vld [vmem:[%s1606_s28 + $0x88] sm:$0xff]  ;;  %p1287_p9 = scmp.ne.s32.totalorder %s1871_s11, %s1286_s1  ;;  %s1380_s6 = smov [#allocation9]  }
  0x80   : > { %788 = vmatpush1.bf16.msra.mxu1 %v575_v12  ;;  %v577_v21 = vpack.c.bf16 %v329_v19, %v325_v18  ;;  %v338_v24 = vld [vmem:[%s1606_s28 + $0xa8] sm:$0xff]  ;;  %703 = vmatprep.subr.bf16.mxu0 %v578_v16  ;;  %v579_v25 = vpack.c.bf16 %v331_v22, %v327_v20  ;;  %v336_v27 = vld [vmem:[%s1606_s28 + $0x98] sm:$0xff]  ;;  %v333_v29 = vld [vmem:[%s1606_s28 + $0x80] sm:$0xff]  ;;  %s1290_s25 = sshll.u32 %s1380_s6, 4  ;;  %s1291_s25 = int_to_ptr.vmem [resolvable:$false] %s1290_s25 }
  0x81   : > { %789 = vmatprep.subr.bf16.mxu1 %v580_v17  ;;  %v582_v26 = vpack.c.bf16 %v338_v24, %v334_v23  ;;  %v340_v28 = vld [vmem:[%s1606_s28 + $0xb8] sm:$0xff]  ;;  %v337_v31 = vld [vmem:[%s1606_s28 + $0xa0] sm:$0xff]  ;;  %v335_v32 = vld [vmem:[%s1606_s28 + $0x90] sm:$0xff]  ;;  %p1288_p13 = pnand %p1287_p9, %p1951_p12  ;;  %s1292_s26 = scalar_lea.vmem %s1291_s25, 2048 }
  0x82   : > { %v584_v30 = vpack.c.bf16 %v340_v28, %v336_v27  ;;  %v339_v33 = vld [vmem:[%s1606_s28 + $0xb0] sm:$0xff]  ;;  %v581_v34 = vpack.c.bf16 %v337_v31, %v333_v29  ;;  %v342_v35 = vld [vmem:[%s1606_s28 + $0xc8] sm:$0xff]  ;;  %v344_v37 = vld [vmem:[%s1606_s28 + $0xd8] sm:$0xff]  ;;  %p1293_p3 = scmp.lt.s32.totalorder %s1871_s11, %s1291_s25  ;;  %p1294_p1 = scmp.lt.s32.totalorder %s1292_s26, %s1286_s1 }
  0x83   : > { %704 = vmatpush1.bf16.msra.mxu0 %v577_v21  ;;  %v346_v36 = vld [vmem:[%s1606_s28 + $0xe8] sm:$0xff]  ;;  %v583_v38 = vpack.c.bf16 %v339_v33, %v335_v32  ;;  %v348_v40 = vld [vmem:[%s1606_s28 + $0xf8] sm:$0xff]  ;;  %v341_v41 = vld [vmem:[%s1606_s28 + $0xc0] sm:$0xff]  ;;  %p1289_p6 = pneg %p1288_p13 }
  0x84   : > { %790 = vmatpush1.bf16.msra.mxu1 %v579_v25  ;;  %705 = vmatprep.subr.bf16.mxu0 %v582_v26  ;;  %v586_v39 = vpack.c.bf16 %v346_v36, %v342_v35  ;;  %v345_v42 = vld [vmem:[%s1606_s28 + $0xe0] sm:$0xff]  ;;  %v588_v43 = vpack.c.bf16 %v348_v40, %v344_v37  ;;  %v343_v44 = vld [vmem:[%s1606_s28 + $0xd0] sm:$0xff]  ;;  %v350_v46 = vld [vmem:[%s1606_s28 + $0x108] sm:$0xff]  ;;  %p1295_p10 = por %p1294_p1, %p1293_p3 }
  0x85   : > { %791 = vmatprep.subr.bf16.mxu1 %v584_v30  ;;  %v347_v45 = vld [vmem:[%s1606_s28 + $0xf0] sm:$0xff]  ;;  %v354_v47 = vld [vmem:[%s1606_s28 + $0x128] sm:$0xff]  ;;  %v352_v48 = vld [vmem:[%s1606_s28 + $0x118] sm:$0xff]  ;;  %v585_v50 = vpack.c.bf16 %v345_v42, %v341_v41 }
  0x86   : > { %v356_v49 = vld [vmem:[%s1606_s28 + $0x138] sm:$0xff]  ;;  %v587_v51 = vpack.c.bf16 %v347_v45, %v343_v44  ;;  %v590_v52 = vpack.c.bf16 %v354_v47, %v350_v46  ;;  %v349_v53 = vld [vmem:[%s1606_s28 + $0x100] sm:$0xff]  ;;  %v351_v55 = vld [vmem:[%s1606_s28 + $0x110] sm:$0xff]  ;;  %p1296_p2 = pnand %p1295_p10, %p1289_p6 }
  0x87   : > { %706 = vmatpush1.bf16.msra.mxu0 %v581_v34  ;;  %v353_v54 = vld [vmem:[%s1606_s28 + $0x120] sm:$0xff]  ;;  %v592_v56 = vpack.c.bf16 %v356_v49, %v352_v48  ;;  %v355_v57 = vld [vmem:[%s1606_s28 + $0x130] sm:$0xff]  ;;  %v358_v58 = vld [vmem:[%s1606_s28 + $0x148] sm:$0xff] }
  0x88   : > { %792 = vmatpush1.bf16.msra.mxu1 %v583_v38  ;;  %707 = vmatprep.subr.bf16.mxu0 %v586_v39  ;;  %v362_v59 = vld [vmem:[%s1606_s28 + $0x168] sm:$0xff]  ;;  %v360_v60 = vld [vmem:[%s1606_s28 + $0x158] sm:$0xff]  ;;  %v589_v62 = vpack.c.bf16 %v353_v54, %v349_v53  ;;  %v591_v63 = vpack.c.bf16 %v355_v57, %v351_v55  ;;  %v357_v1 = vld [vmem:[%s1606_s28 + $0x140] sm:$0xff] }
  0x89   : > { %793 = vmatprep.subr.bf16.mxu1 %v588_v43  ;;  %v364_v61 = vld [vmem:[%s1606_s28 + $0x178] sm:$0xff]  ;;  %v594_v0 = vpack.c.bf16 %v362_v59, %v358_v58  ;;  %v361_v2 = vld [vmem:[%s1606_s28 + $0x160] sm:$0xff]  ;;  %v359_v3 = vld [vmem:[%s1606_s28 + $0x150] sm:$0xff] }
  0x8a   : > { %v596_v4 = vpack.c.bf16 %v364_v61, %v360_v60  ;;  %v363_v5 = vld [vmem:[%s1606_s28 + $0x170] sm:$0xff]  ;;  %v366_v6 = vld [vmem:[%s1606_s28 + $0x188] sm:$0xff]  ;;  %v368_v8 = vld [vmem:[%s1606_s28 + $0x198] sm:$0xff]  ;;  %v593_v10 = vpack.c.bf16 %v361_v2, %v357_v1 }
  0x8b   : > { %708 = vmatpush1.bf16.msra.mxu0 %v585_v50  ;;  %v370_v7 = vld [vmem:[%s1606_s28 + $0x1a8] sm:$0xff]  ;;  %v372_v9 = vld [vmem:[%s1606_s28 + $0x1b8] sm:$0xff]  ;;  %v595_v11 = vpack.c.bf16 %v363_v5, %v359_v3  ;;  %v365_v13 = vld [vmem:[%s1606_s28 + $0x180] sm:$0xff] }
  0x8c   : > { %794 = vmatpush1.bf16.msra.mxu1 %v587_v51  ;;  %709 = vmatprep.subr.bf16.mxu0 %v590_v52  ;;  %v598_v12 = vpack.c.bf16 %v370_v7, %v366_v6  ;;  %v369_v14 = vld [vmem:[%s1606_s28 + $0x1a0] sm:$0xff]  ;;  %v367_v15 = vld [vmem:[%s1606_s28 + $0x190] sm:$0xff]  ;;  %v600_v16 = vpack.c.bf16 %v372_v9, %v368_v8  ;;  %v374_v18 = vld [vmem:[%s1606_s28 + $0x1c8] sm:$0xff] }
  0x8d   : > { %795 = vmatprep.subr.bf16.mxu1 %v592_v56  ;;  %v371_v17 = vld [vmem:[%s1606_s28 + $0x1b0] sm:$0xff]  ;;  %v378_v19 = vld [vmem:[%s1606_s28 + $0x1e8] sm:$0xff]  ;;  %v376_v20 = vld [vmem:[%s1606_s28 + $0x1d8] sm:$0xff]  ;;  %v597_v22 = vpack.c.bf16 %v369_v14, %v365_v13 }
  0x8e   : > { %v380_v21 = vld [vmem:[%s1606_s28 + $0x1f8] sm:$0xff]  ;;  %v599_v23 = vpack.c.bf16 %v371_v17, %v367_v15  ;;  %v602_v24 = vpack.c.bf16 %v378_v19, %v374_v18  ;;  %v373_v25 = vld [vmem:[%s1606_s28 + $0x1c0] sm:$0xff]  ;;  %v375_v27 = vld [vmem:[%s1606_s28 + $0x1d0] sm:$0xff] }
  0x8f   : > { %710 = vmatpush1.bf16.msra.mxu0 %v589_v62  ;;  %v377_v26 = vld [vmem:[%s1606_s28 + $0x1e0] sm:$0xff]  ;;  %v604_v28 = vpack.c.bf16 %v380_v21, %v376_v20  ;;  %v379_v29 = vld [vmem:[%s1606_s28 + $0x1f0] sm:$0xff]  ;;  %v382_v30 = vld [vmem:[%s1606_s28 + $0x208] sm:$0xff] }
  0x90   : > { %796 = vmatpush1.bf16.msra.mxu1 %v591_v63  ;;  %711 = vmatprep.subr.bf16.mxu0 %v594_v0  ;;  %v386_v31 = vld [vmem:[%s1606_s28 + $0x228] sm:$0xff]  ;;  %v384_v32 = vld [vmem:[%s1606_s28 + $0x218] sm:$0xff]  ;;  %v601_v34 = vpack.c.bf16 %v377_v26, %v373_v25  ;;  %v603_v35 = vpack.c.bf16 %v379_v29, %v375_v27  ;;  %v381_v37 = vld [vmem:[%s1606_s28 + $0x200] sm:$0xff] }
  0x91   : > { %797 = vmatprep.subr.bf16.mxu1 %v596_v4  ;;  %v388_v33 = vld [vmem:[%s1606_s28 + $0x238] sm:$0xff]  ;;  %v606_v36 = vpack.c.bf16 %v386_v31, %v382_v30  ;;  %v385_v38 = vld [vmem:[%s1606_s28 + $0x220] sm:$0xff]  ;;  %v383_v39 = vld [vmem:[%s1606_s28 + $0x210] sm:$0xff] }
  0x92   : > { %v608_v40 = vpack.c.bf16 %v388_v33, %v384_v32  ;;  %v387_v41 = vld [vmem:[%s1606_s28 + $0x230] sm:$0xff]  ;;  %v390_v42 = vld [vmem:[%s1606_s28 + $0x248] sm:$0xff]  ;;  %v392_v44 = vld [vmem:[%s1606_s28 + $0x258] sm:$0xff]  ;;  %v605_v46 = vpack.c.bf16 %v385_v38, %v381_v37 }
  0x93   : > { %712 = vmatpush1.bf16.msra.mxu0 %v593_v10  ;;  %v394_v43 = vld [vmem:[%s1606_s28 + $0x268] sm:$0xff]  ;;  %v396_v45 = vld [vmem:[%s1606_s28 + $0x278] sm:$0xff]  ;;  %v607_v47 = vpack.c.bf16 %v387_v41, %v383_v39  ;;  %v389_v49 = vld [vmem:[%s1606_s28 + $0x240] sm:$0xff] }
  0x94   : > { %798 = vmatpush1.bf16.msra.mxu1 %v595_v11  ;;  %713 = vmatprep.subr.bf16.mxu0 %v598_v12  ;;  %v610_v48 = vpack.c.bf16 %v394_v43, %v390_v42  ;;  %v393_v50 = vld [vmem:[%s1606_s28 + $0x260] sm:$0xff]  ;;  %v391_v51 = vld [vmem:[%s1606_s28 + $0x250] sm:$0xff]  ;;  %v612_v52 = vpack.c.bf16 %v396_v45, %v392_v44  ;;  %v398_v54 = vld [vmem:[%s1606_s28 + $0x288] sm:$0xff] }
  0x95   : > { %799 = vmatprep.subr.bf16.mxu1 %v600_v16  ;;  %v395_v53 = vld [vmem:[%s1606_s28 + $0x270] sm:$0xff]  ;;  %v402_v55 = vld [vmem:[%s1606_s28 + $0x2a8] sm:$0xff]  ;;  %v400_v56 = vld [vmem:[%s1606_s28 + $0x298] sm:$0xff]  ;;  %v609_v58 = vpack.c.bf16 %v393_v50, %v389_v49 }
  0x96   : > { %v404_v57 = vld [vmem:[%s1606_s28 + $0x2b8] sm:$0xff]  ;;  %v611_v59 = vpack.c.bf16 %v395_v53, %v391_v51  ;;  %v614_v60 = vpack.c.bf16 %v402_v55, %v398_v54  ;;  %v397_v61 = vld [vmem:[%s1606_s28 + $0x280] sm:$0xff]  ;;  %v399_v63 = vld [vmem:[%s1606_s28 + $0x290] sm:$0xff] }
  0x97   : > { %714 = vmatpush1.bf16.msra.mxu0 %v597_v22  ;;  %v401_v62 = vld [vmem:[%s1606_s28 + $0x2a0] sm:$0xff]  ;;  %v616_v0 = vpack.c.bf16 %v404_v57, %v400_v56  ;;  %v403_v1 = vld [vmem:[%s1606_s28 + $0x2b0] sm:$0xff]  ;;  %v406_v2 = vld [vmem:[%s1606_s28 + $0x2c8] sm:$0xff] }
  0x98   : > { %800 = vmatpush1.bf16.msra.mxu1 %v599_v23  ;;  %715 = vmatprep.subr.bf16.mxu0 %v602_v24  ;;  %v410_v3 = vld [vmem:[%s1606_s28 + $0x2e8] sm:$0xff]  ;;  %v408_v4 = vld [vmem:[%s1606_s28 + $0x2d8] sm:$0xff]  ;;  %v613_v6 = vpack.c.bf16 %v401_v62, %v397_v61  ;;  %v405_v7 = vld [vmem:[%s1606_s28 + $0x2c0] sm:$0xff]  ;;  %v615_v8 = vpack.c.bf16 %v403_v1, %v399_v63 }
  0x99   : > { %801 = vmatprep.subr.bf16.mxu1 %v604_v28  ;;  %v412_v5 = vld [vmem:[%s1606_s28 + $0x2f8] sm:$0xff]  ;;  %v618_v9 = vpack.c.bf16 %v410_v3, %v406_v2  ;;  %v409_v10 = vld [vmem:[%s1606_s28 + $0x2e0] sm:$0xff]  ;;  %v407_v11 = vld [vmem:[%s1606_s28 + $0x2d0] sm:$0xff] }
  0x9a   : > { %v411_v12 = vld [vmem:[%s1606_s28 + $0x2f0] sm:$0xff]  ;;  %v620_v13 = vpack.c.bf16 %v412_v5, %v408_v4  ;;  %v414_v14 = vld [vmem:[%s1606_s28 + $0x308] sm:$0xff]  ;;  %v416_v17 = vld [vmem:[%s1606_s28 + $0x318] sm:$0xff]  ;;  %v617_v20 = vpack.c.bf16 %v409_v10, %v405_v7 }
  0x9b   : > { %716 = vmatpush1.bf16.msra.mxu0 %v601_v34  ;;  %v418_v15 = vld [vmem:[%s1606_s28 + $0x328] sm:$0xff]  ;;  %v420_v18 = vld [vmem:[%s1606_s28 + $0x338] sm:$0xff]  ;;  %v619_v22 = vpack.c.bf16 %v411_v12, %v407_v11  ;;  %v413_v24 = vld [vmem:[%s1606_s28 + $0x300] sm:$0xff] }
  0x9c   : > { %802 = vmatpush1.bf16.msra.mxu1 %v603_v35  ;;  %717 = vmatprep.subr.bf16.mxu0 %v606_v36  ;;  %v306_v16 = vld [vmem:[#allocation3 + $0x8] sm:$0xff]  ;;  %v622_v23 = vpack.c.bf16 %v418_v15, %v414_v14  ;;  %v417_v25 = vld [vmem:[%s1606_s28 + $0x320] sm:$0xff]  ;;  %v415_v26 = vld [vmem:[%s1606_s28 + $0x310] sm:$0xff]  ;;  %v624_v27 = vpack.c.bf16 %v420_v18, %v416_v17 }
  0x9d   : > { %803 = vmatprep.subr.bf16.mxu1 %v608_v40  ;;  %v310_v19 = vld [vmem:[#allocation3 + $0x28] sm:$0xff]  ;;  %v419_v28 = vld [vmem:[%s1606_s28 + $0x330] sm:$0xff]  ;;  %v424_v31 = vld [vmem:[%s1606_s28 + $0x358] sm:$0xff]  ;;  %v621_v33 = vpack.c.bf16 %v417_v25, %v413_v24 }
  0x9e   : > { %v314_v21 = vpack.c.bf16 %v310_v19, %v306_v16  ;;  %v422_v29 = vld [vmem:[%s1606_s28 + $0x348] sm:$0xff]  ;;  %v428_v32 = vld [vmem:[%s1606_s28 + $0x378] sm:$0xff]  ;;  %v623_v34 = vpack.c.bf16 %v419_v28, %v415_v26  ;;  %v421_v36 = vld [vmem:[%s1606_s28 + $0x340] sm:$0xff] }
  0x9f   : > { %718 = vmatpush1.bf16.msra.mxu0 %v605_v46  ;;  %v426_v30 = vld [vmem:[%s1606_s28 + $0x368] sm:$0xff]  ;;  %v425_v37 = vld [vmem:[%s1606_s28 + $0x360] sm:$0xff]  ;;  %v423_v38 = vld [vmem:[%s1606_s28 + $0x350] sm:$0xff]  ;;  %v628_v39 = vpack.c.bf16 %v428_v32, %v424_v31 }
  0xa0   : > { %804 = vmatpush1.bf16.msra.mxu1 %v607_v47  ;;  %719 = vmatprep.subr.bf16.mxu0 %v610_v48  ;;  %v626_v35 = vpack.c.bf16 %v426_v30, %v422_v29  ;;  %v427_v40 = vld [vmem:[%s1606_s28 + $0x370] sm:$0xff]  ;;  %v430_v41 = vld [vmem:[%s1606_s28 + $0x388] sm:$0xff]  ;;  %v432_v43 = vld [vmem:[%s1606_s28 + $0x398] sm:$0xff]  ;;  %v625_v45 = vpack.c.bf16 %v425_v37, %v421_v36 }
  0xa1   : > { %805 = vmatprep.subr.bf16.mxu1 %v612_v52  ;;  %733 = vmatprep.mubr.bf16.mxu0 %v314_v21  ;;  %v434_v42 = vld [vmem:[%s1606_s28 + $0x3a8] sm:$0xff]  ;;  %v436_v44 = vld [vmem:[%s1606_s28 + $0x3b8] sm:$0xff]  ;;  %v627_v46 = vpack.c.bf16 %v427_v40, %v423_v38  ;;  %v429_v48 = vld [vmem:[%s1606_s28 + $0x380] sm:$0xff] }
  0xa2   : > { %819 = vmatprep.mubr.bf16.mxu1 %v314_v21  ;;  %v630_v47 = vpack.c.bf16 %v434_v42, %v430_v41  ;;  %v433_v49 = vld [vmem:[%s1606_s28 + $0x3a0] sm:$0xff]  ;;  %v431_v50 = vld [vmem:[%s1606_s28 + $0x390] sm:$0xff]  ;;  %v632_v51 = vpack.c.bf16 %v436_v44, %v432_v43  ;;  %v438_v53 = vld [vmem:[%s1606_s28 + $0x3c8] sm:$0xff] }
  0xa3   : > { %720 = vmatpush1.bf16.msra.mxu0 %v609_v58  ;;  %v435_v52 = vld [vmem:[%s1606_s28 + $0x3b0] sm:$0xff]  ;;  %v442_v54 = vld [vmem:[%s1606_s28 + $0x3e8] sm:$0xff]  ;;  %v440_v55 = vld [vmem:[%s1606_s28 + $0x3d8] sm:$0xff]  ;;  %v629_v57 = vpack.c.bf16 %v433_v49, %v429_v48 }
  0xa4   : > { %806 = vmatpush1.bf16.msra.mxu1 %v611_v59  ;;  %721 = vmatprep.subr.bf16.mxu0 %v614_v60  ;;  %v444_v56 = vld [vmem:[%s1606_s28 + $0x3f8] sm:$0xff]  ;;  %v631_v58 = vpack.c.bf16 %v435_v52, %v431_v50  ;;  %v634_v59 = vpack.c.bf16 %v442_v54, %v438_v53  ;;  %v437_v60 = vld [vmem:[%s1606_s28 + $0x3c0] sm:$0xff]  ;;  %v439_v62 = vld [vmem:[%s1606_s28 + $0x3d0] sm:$0xff] }
  0xa5   : > { %807 = vmatprep.subr.bf16.mxu1 %v616_v0  ;;  %v441_v61 = vld [vmem:[%s1606_s28 + $0x3e0] sm:$0xff]  ;;  %v636_v63 = vpack.c.bf16 %v444_v56, %v440_v55  ;;  %v443_v0 = vld [vmem:[%s1606_s28 + $0x3f0] sm:$0xff]  ;;  %v446_v1 = vld [vmem:[%s1606_s28 + $0x408] sm:$0xff] }
  0xa6   : > { %v450_v2 = vld [vmem:[%s1606_s28 + $0x428] sm:$0xff]  ;;  %v448_v3 = vld [vmem:[%s1606_s28 + $0x418] sm:$0xff]  ;;  %v633_v5 = vpack.c.bf16 %v441_v61, %v437_v60  ;;  %v309_v7 = vld [vmem:[#allocation3 + $0x20] sm:$0xff] }
  0xa7   : > { %722 = vmatpush1.bf16.msra.mxu0 %v613_v6  ;;  %v452_v4 = vld [vmem:[%s1606_s28 + $0x438] sm:$0xff]  ;;  %v305_v6 = vld [vmem:[#allocation3] sm:$0xff]  ;;  %v447_v12 = vld [vmem:[%s1606_s28 + $0x410] sm:$0xff] }
  0xa8   : > { %808 = vmatpush1.bf16.msra.mxu1 %v615_v8  ;;  %723 = vmatprep.subr.bf16.mxu0 %v618_v9  ;;  %v635_v8 = vpack.c.bf16 %v443_v0, %v439_v62  ;;  %v638_v9 = vpack.c.bf16 %v450_v2, %v446_v1  ;;  %v445_v10 = vld [vmem:[%s1606_s28 + $0x400] sm:$0xff]  ;;  %v451_v14 = vld [vmem:[%s1606_s28 + $0x430] sm:$0xff]  ;;  %v454_v15 = vld [vmem:[%s1606_s28 + $0x448] sm:$0xff]  ;;  %v313_v17 = vpack.c.bf16 %v309_v7, %v305_v6 }
  0xa9   : > { %809 = vmatprep.subr.bf16.mxu1 %v620_v13  ;;  %v449_v11 = vld [vmem:[%s1606_s28 + $0x420] sm:$0xff]  ;;  %v640_v13 = vpack.c.bf16 %v452_v4, %v448_v3  ;;  %v458_v16 = vld [vmem:[%s1606_s28 + $0x468] sm:$0xff]  ;;  %v456_v18 = vld [vmem:[%s1606_s28 + $0x458] sm:$0xff]  ;;  %v639_v21 = vpack.c.bf16 %v451_v14, %v447_v12 }
  0xaa   : > { %v460_v19 = vld [vmem:[%s1606_s28 + $0x478] sm:$0xff]  ;;  %v457_v24 = vld [vmem:[%s1606_s28 + $0x460] sm:$0xff]  ;;  %v455_v25 = vld [vmem:[%s1606_s28 + $0x450] sm:$0xff] }
  0xab   : > { %724 = vmatpush1.bf16.msra.mxu0 %v617_v20  ;;  %v637_v20 = vpack.c.bf16 %v449_v11, %v445_v10  ;;  %v644_v26 = vpack.c.bf16 %v460_v19, %v456_v18  ;;  %v462_v28 = vld [vmem:[%s1606_s28 + $0x488] sm:$0xff]  ;;  %v464_v30 = vld [vmem:[%s1606_s28 + $0x498] sm:$0xff]  ;;  %v465_v36 = vld [vmem:[%s1606_s28 + $0x4a0] sm:$0xff] }
  0xac   : > { %810 = vmatpush1.bf16.msra.mxu1 %v619_v22  ;;  %725 = vmatprep.subr.bf16.mxu0 %v622_v23  ;;  %v642_v22 = vpack.c.bf16 %v458_v16, %v454_v15  ;;  %v453_v23 = vld [vmem:[%s1606_s28 + $0x440] sm:$0xff]  ;;  %v466_v29 = vld [vmem:[%s1606_s28 + $0x4a8] sm:$0xff]  ;;  %v468_v31 = vld [vmem:[%s1606_s28 + $0x4b8] sm:$0xff] }
  0xad   : > { %811 = vmatprep.subr.bf16.mxu1 %v624_v27  ;;  %v459_v27 = vld [vmem:[%s1606_s28 + $0x470] sm:$0xff]  ;;  %v641_v32 = vpack.c.bf16 %v457_v24, %v453_v23  ;;  %v648_v38 = vpack.c.bf16 %v468_v31, %v464_v30  ;;  %v470_v40 = vld [vmem:[%s1606_s28 + $0x4c8] sm:$0xff]  ;;  %v472_v42 = vld [vmem:[%s1606_s28 + $0x4d8] sm:$0xff] }
  0xae   : > { %v463_v37 = vld [vmem:[%s1606_s28 + $0x490] sm:$0xff]  ;;  %v474_v41 = vld [vmem:[%s1606_s28 + $0x4e8] sm:$0xff]  ;;  %v476_v43 = vld [vmem:[%s1606_s28 + $0x4f8] sm:$0xff] }
  0xaf   : > { %726 = vmatpush1.bf16.msra.mxu0 %v621_v33  ;;  %v643_v33 = vpack.c.bf16 %v459_v27, %v455_v25  ;;  %v473_v48 = vld [vmem:[%s1606_s28 + $0x4e0] sm:$0xff]  ;;  %v471_v49 = vld [vmem:[%s1606_s28 + $0x4d0] sm:$0xff]  ;;  %v652_v50 = vpack.c.bf16 %v476_v43, %v472_v42  ;;  %v478_v52 = vld [vmem:[%s1606_s28 + $0x508] sm:$0xff] }
  0xb0   : > { %812 = vmatpush1.bf16.msra.mxu1 %v623_v34  ;;  %727 = vmatprep.subr.bf16.mxu0 %v626_v35  ;;  %v646_v34 = vpack.c.bf16 %v466_v29, %v462_v28  ;;  %v461_v35 = vld [vmem:[%s1606_s28 + $0x480] sm:$0xff]  ;;  %v482_v53 = vld [vmem:[%s1606_s28 + $0x528] sm:$0xff]  ;;  %v480_v54 = vld [vmem:[%s1606_s28 + $0x518] sm:$0xff] }
  0xb1   : > { %813 = vmatprep.subr.bf16.mxu1 %v628_v39  ;;  %v467_v39 = vld [vmem:[%s1606_s28 + $0x4b0] sm:$0xff]  ;;  %v645_v44 = vpack.c.bf16 %v465_v36, %v461_v35  ;;  %v484_v55 = vld [vmem:[%s1606_s28 + $0x538] sm:$0xff]  ;;  %v481_v60 = vld [vmem:[%s1606_s28 + $0x520] sm:$0xff] }
  0xb2   : > { %v479_v61 = vld [vmem:[%s1606_s28 + $0x510] sm:$0xff]  ;;  %v656_v62 = vpack.c.bf16 %v484_v55, %v480_v54  ;;  %v486_v0 = vld [vmem:[%s1606_s28 + $0x548] sm:$0xff]  ;;  %v488_v2 = vld [vmem:[%s1606_s28 + $0x558] sm:$0xff] }
  0xb3   : > { %728 = vmatpush1.bf16.msra.mxu0 %v625_v45  ;;  %v647_v45 = vpack.c.bf16 %v467_v39, %v463_v37  ;;  %v490_v1 = vld [vmem:[%s1606_s28 + $0x568] sm:$0xff]  ;;  %v492_v3 = vld [vmem:[%s1606_s28 + $0x578] sm:$0xff]  ;;  %v485_v7 = vld [vmem:[%s1606_s28 + $0x540] sm:$0xff] }
  0xb4   : > { %814 = vmatpush1.bf16.msra.mxu1 %v627_v46  ;;  %729 = vmatprep.subr.bf16.mxu0 %v630_v47  ;;  %v650_v46 = vpack.c.bf16 %v474_v41, %v470_v40  ;;  %v469_v47 = vld [vmem:[%s1606_s28 + $0x4c0] sm:$0xff]  ;;  %v658_v6 = vpack.c.bf16 %v490_v1, %v486_v0  ;;  %v660_v10 = vpack.c.bf16 %v492_v3, %v488_v2  ;;  %v491_v11 = vld [vmem:[%s1606_s28 + $0x570] sm:$0xff]  ;;  %v494_v12 = vld [vmem:[%s1606_s28 + $0x588] sm:$0xff] }
  0xb5   : > { %815 = vmatprep.subr.bf16.mxu1 %v632_v51  ;;  %v475_v51 = vld [vmem:[%s1606_s28 + $0x4f0] sm:$0xff]  ;;  %v649_v56 = vpack.c.bf16 %v473_v48, %v469_v47  ;;  %v496_v14 = vld [vmem:[%s1606_s28 + $0x598] sm:$0xff]  ;;  %v502_v24 = vld [vmem:[%s1606_s28 + $0x5c8] sm:$0xff] }
  0xb6   : > { %v500_v15 = vld [vmem:[%s1606_s28 + $0x5b8] sm:$0xff]  ;;  %v506_v25 = vld [vmem:[%s1606_s28 + $0x5e8] sm:$0xff]  ;;  %v505_v35 = vld [vmem:[%s1606_s28 + $0x5e0] sm:$0xff] }
  0xb7   : > { %730 = vmatpush1.bf16.msra.mxu0 %v629_v57  ;;  %v651_v57 = vpack.c.bf16 %v475_v51, %v471_v49  ;;  %v664_v23 = vpack.c.bf16 %v500_v15, %v496_v14  ;;  %v504_v27 = vld [vmem:[%s1606_s28 + $0x5d8] sm:$0xff]  ;;  %v503_v36 = vld [vmem:[%s1606_s28 + $0x5d0] sm:$0xff]  ;;  %v510_v39 = vld [vmem:[%s1606_s28 + $0x608] sm:$0xff] }
  0xb8   : > { %816 = vmatpush1.bf16.msra.mxu1 %v631_v58  ;;  %731 = vmatprep.subr.bf16.mxu0 %v634_v59  ;;  %v654_v58 = vpack.c.bf16 %v482_v53, %v478_v52  ;;  %v477_v59 = vld [vmem:[%s1606_s28 + $0x500] sm:$0xff]  ;;  %v508_v28 = vld [vmem:[%s1606_s28 + $0x5f8] sm:$0xff]  ;;  %v514_v40 = vld [vmem:[%s1606_s28 + $0x628] sm:$0xff] }
  0xb9   : > { %817 = vmatprep.subr.bf16.mxu1 %v636_v63  ;;  %v483_v63 = vld [vmem:[%s1606_s28 + $0x530] sm:$0xff]  ;;  %v653_v4 = vpack.c.bf16 %v481_v60, %v477_v59  ;;  %v312_v29 = vld [vmem:[#allocation3 + $0x38] sm:$0xff]  ;;  %v668_v37 = vpack.c.bf16 %v508_v28, %v504_v27  ;;  %v513_v47 = vld [vmem:[%s1606_s28 + $0x620] sm:$0xff] }
  0xba   : > { %v512_v41 = vld [vmem:[%s1606_s28 + $0x618] sm:$0xff]  ;;  %v511_v48 = vld [vmem:[%s1606_s28 + $0x610] sm:$0xff]  ;;  %v518_v51 = vld [vmem:[%s1606_s28 + $0x648] sm:$0xff] }
  0xbb   : > { %732 = vmatpush1.bf16.msra.mxu0 %v633_v5  ;;  %v655_v5 = vpack.c.bf16 %v483_v63, %v479_v61  ;;  %v516_v42 = vld [vmem:[%s1606_s28 + $0x638] sm:$0xff]  ;;  %v522_v52 = vld [vmem:[%s1606_s28 + $0x668] sm:$0xff]  ;;  %v521_v59 = vld [vmem:[%s1606_s28 + $0x660] sm:$0xff] }
  0xbc   : > { %818 = vmatpush1.bf16.msra.mxu1 %v635_v8  ;;  %744 = vmatprep.subr.bf16.mxu0 %v638_v9  ;;  %v489_v8 = vld [vmem:[%s1606_s28 + $0x560] sm:$0xff]  ;;  %v487_v9 = vld [vmem:[%s1606_s28 + $0x550] sm:$0xff]  ;;  %v672_v49 = vpack.c.bf16 %v516_v42, %v512_v41  ;;  %v520_v53 = vld [vmem:[%s1606_s28 + $0x658] sm:$0xff] }
  0xbd   : > { %830 = vmatprep.subr.bf16.mxu1 %v640_v13  ;;  %v498_v13 = vld [vmem:[%s1606_s28 + $0x5a8] sm:$0xff]  ;;  %v657_v16 = vpack.c.bf16 %v489_v8, %v485_v7  ;;  %v659_v18 = vpack.c.bf16 %v491_v11, %v487_v9  ;;  %v524_v54 = vld [vmem:[%s1606_s28 + $0x678] sm:$0xff]  ;;  %v519_v60 = vld [vmem:[%s1606_s28 + $0x650] sm:$0xff] }
  0xbe   : > { %734 = vmatmul.mubr.bf16.vlgmr.msra.gmra.mrb[0].mxu0 %v313_v17  ;;  %v662_v19 = vpack.c.bf16 %v498_v13, %v494_v12  ;;  %v676_v61 = vpack.c.bf16 %v524_v54, %v520_v53  ;;  %v526_v63 = vld [vmem:[%s1606_s28 + $0x688] sm:$0xff]  ;;  %v528_v1 = vld [vmem:[%s1606_s28 + $0x698] sm:$0xff]  ;;  %v529_v7 = vld [vmem:[%s1606_s28 + $0x6a0] sm:$0xff] }
  0xbf   : > { %745 = vmatpush1.bf16.msra.mxu0 %v637_v20  ;;  %820 = vmatmul.mubr.bf16.vlgmr.msra.gmra.mrb[0].mxu1 %v313_v17  ;;  %v493_v17 = vld [vmem:[%s1606_s28 + $0x580] sm:$0xff]  ;;  %v530_v0 = vld [vmem:[%s1606_s28 + $0x6a8] sm:$0xff]  ;;  %v532_v2 = vld [vmem:[%s1606_s28 + $0x6b8] sm:$0xff] }
  0xc0   : > { %831 = vmatpush1.bf16.msra.mxu1 %v639_v21  ;;  %746 = vmatprep.subr.bf16.mxu0 %v642_v22  ;;  %v497_v20 = vld [vmem:[%s1606_s28 + $0x5a0] sm:$0xff]  ;;  %v495_v21 = vld [vmem:[%s1606_s28 + $0x590] sm:$0xff]  ;;  %v680_v9 = vpack.c.bf16 %v532_v2, %v528_v1  ;;  %v534_v11 = vld [vmem:[%s1606_s28 + $0x6c8] sm:$0xff] }
  0xc1   : > { %832 = vmatprep.subr.bf16.mxu1 %v644_v26  ;;  %v499_v22 = vld [vmem:[%s1606_s28 + $0x5b0] sm:$0xff]  ;;  %v308_v26 = vld [vmem:[#allocation3 + $0x18] sm:$0xff]  ;;  %v661_v30 = vpack.c.bf16 %v497_v20, %v493_v17  ;;  %v538_v12 = vld [vmem:[%s1606_s28 + $0x6e8] sm:$0xff] }
  0xc2   : > { %v316_v31 = vpack.c.bf16 %v312_v29, %v308_v26  ;;  %v527_v8 = vld [vmem:[%s1606_s28 + $0x690] sm:$0xff]  ;;  %v536_v13 = vld [vmem:[%s1606_s28 + $0x6d8] sm:$0xff]  ;;  %v682_v17 = vpack.c.bf16 %v538_v12, %v534_v11  ;;  %v549_v42 = vld [vmem:[%s1606_s28 + $0x740] sm:$0xff]  ;;  %v902_v12 = vlaneseq }
  0xc3   : > { %747 = vmatpush1.bf16.msra.mxu0 %v641_v32  ;;  %v663_v32 = vpack.c.bf16 %v499_v22, %v495_v21  ;;  %v540_v14 = vld [vmem:[%s1606_s28 + $0x6f8] sm:$0xff]  ;;  %v535_v20 = vld [vmem:[%s1606_s28 + $0x6d0] sm:$0xff]  ;;  %v557_v54 = vld [vmem:[%s1606_s28 + $0x780] sm:$0xff] }
  0xc4   : > { %833 = vmatpush1.bf16.msra.mxu1 %v643_v33  ;;  %748 = vmatprep.subr.bf16.mxu0 %v646_v34  ;;  %v666_v33 = vpack.c.bf16 %v506_v25, %v502_v24  ;;  %v501_v34 = vld [vmem:[%s1606_s28 + $0x5c0] sm:$0xff]  ;;  %v684_v21 = vpack.c.bf16 %v540_v14, %v536_v13  ;;  %v539_v22 = vld [vmem:[%s1606_s28 + $0x6f0] sm:$0xff]  ;;  %v546_v24 = vld [vmem:[%s1606_s28 + $0x728] sm:$0xff]  ;;  %v903_v13 = vshrl.u32 %v902_v12, 7 }
  0xc5   : > { %834 = vmatprep.subr.bf16.mxu1 %v648_v38  ;;  %v507_v38 = vld [vmem:[%s1606_s28 + $0x5f0] sm:$0xff]  ;;  %776 = vmatprep.mubr.bf16.mxu0 %v316_v31  ;;  %v665_v43 = vpack.c.bf16 %v505_v35, %v501_v34  ;;  %v544_v25 = vld [vmem:[%s1606_s28 + $0x718] sm:$0xff]  ;;  %v683_v28 = vpack.c.bf16 %v539_v22, %v535_v20  ;;  %v550_v35 = vld [vmem:[%s1606_s28 + $0x748] sm:$0xff] }
  0xc6   : > { %862 = vmatprep.mubr.bf16.mxu1 %v316_v31  ;;  %v548_v26 = vld [vmem:[%s1606_s28 + $0x738] sm:$0xff]  ;;  %v545_v31 = vld [vmem:[%s1606_s28 + $0x720] sm:$0xff]  ;;  %v547_v34 = vld [vmem:[%s1606_s28 + $0x730] sm:$0xff]  ;;  %v904_v14 = vsub.s32 0, %v903_v13 }
  0xc7   : > { %749 = vmatpush1.bf16.msra.mxu0 %v645_v44  ;;  %v667_v44 = vpack.c.bf16 %v507_v38, %v503_v36  ;;  %v554_v36 = vld [vmem:[%s1606_s28 + $0x768] sm:$0xff]  ;;  %v556_v38 = vld [vmem:[%s1606_s28 + $0x778] sm:$0xff]  ;;  %v565_v2 = vld [vmem:[%s1606_s28 + $0x7c0] sm:$0xff] }
  0xc8   : > { %835 = vmatpush1.bf16.msra.mxu1 %v647_v45  ;;  %750 = vmatprep.subr.bf16.mxu0 %v650_v46  ;;  %v670_v45 = vpack.c.bf16 %v514_v40, %v510_v39  ;;  %v509_v46 = vld [vmem:[%s1606_s28 + $0x600] sm:$0xff]  ;;  %v690_v41 = vpack.c.bf16 %v554_v36, %v550_v35 }
  0xc9   : > { %836 = vmatprep.subr.bf16.mxu1 %v652_v50  ;;  %v515_v50 = vld [vmem:[%s1606_s28 + $0x630] sm:$0xff]  ;;  %v669_v55 = vpack.c.bf16 %v513_v47, %v509_v46  ;;  %v558_v47 = vld [vmem:[%s1606_s28 + $0x788] sm:$0xff] }
  0xca   : > { %v555_v46 = vld [vmem:[%s1606_s28 + $0x770] sm:$0xff] }
  0xcb   : > { %751 = vmatpush1.bf16.msra.mxu0 %v649_v56  ;;  %v671_v56 = vpack.c.bf16 %v515_v50, %v511_v48  ;;  %v562_v48 = vld [vmem:[%s1606_s28 + $0x7a8] sm:$0xff]  ;;  %v564_v50 = vld [vmem:[%s1606_s28 + $0x7b8] sm:$0xff] }
  0xcc   : > { %837 = vmatpush1.bf16.msra.mxu1 %v651_v57  ;;  %752 = vmatprep.subr.bf16.mxu0 %v654_v58  ;;  %v674_v57 = vpack.c.bf16 %v522_v52, %v518_v51  ;;  %v517_v58 = vld [vmem:[%s1606_s28 + $0x640] sm:$0xff]  ;;  %v694_v53 = vpack.c.bf16 %v562_v48, %v558_v47 }
  0xcd   : > { %838 = vmatprep.subr.bf16.mxu1 %v656_v62  ;;  %v523_v62 = vld [vmem:[%s1606_s28 + $0x670] sm:$0xff]  ;;  %v673_v3 = vpack.c.bf16 %v521_v59, %v517_v58  ;;  %v566_v59 = vld [vmem:[%s1606_s28 + $0x7c8] sm:$0xff] }
  0xce   : > { %v563_v58 = vld [vmem:[%s1606_s28 + $0x7b0] sm:$0xff] }
  0xcf   : > { %753 = vmatpush1.bf16.msra.mxu0 %v653_v4  ;;  %v675_v4 = vpack.c.bf16 %v523_v62, %v519_v60  ;;  %v570_v60 = vld [vmem:[%s1606_s28 + $0x7e8] sm:$0xff]  ;;  %v572_v62 = vld [vmem:[%s1606_s28 + $0x7f8] sm:$0xff] }
  0xd0   : > { %839 = vmatpush1.bf16.msra.mxu1 %v655_v5  ;;  %754 = vmatprep.subr.bf16.mxu0 %v658_v6  ;;  %v678_v5 = vpack.c.bf16 %v530_v0, %v526_v63  ;;  %v525_v6 = vld [vmem:[%s1606_s28 + $0x680] sm:$0xff]  ;;  %v698_v1 = vpack.c.bf16 %v570_v60, %v566_v59 }
  0xd1   : > { %840 = vmatprep.subr.bf16.mxu1 %v660_v10  ;;  %v531_v10 = vld [vmem:[%s1606_s28 + $0x6b0] sm:$0xff]  ;;  %v677_v15 = vpack.c.bf16 %v529_v7, %v525_v6 }
  0xd2   : > { %v571_v6 = vld [vmem:[%s1606_s28 + $0x7f0] sm:$0xff] }
  0xd3   : > { %755 = vmatpush1.bf16.msra.mxu0 %v657_v16  ;;  %v679_v16 = vpack.c.bf16 %v531_v10, %v527_v8  ;;  %v307_v8 = vld [vmem:[#allocation3 + $0x10] sm:$0xff] }
  0xd4   : > { %841 = vmatpush1.bf16.msra.mxu1 %v659_v18  ;;  %756 = vmatprep.subr.bf16.mxu0 %v662_v19  ;;  %v533_v18 = vld [vmem:[%s1606_s28 + $0x6c0] sm:$0xff] }
  0xd5   : > { %842 = vmatprep.subr.bf16.mxu1 %v664_v23  ;;  %v537_v19 = vld [vmem:[%s1606_s28 + $0x6e0] sm:$0xff]  ;;  %v542_v23 = vld [vmem:[%s1606_s28 + $0x708] sm:$0xff] }
  0xd6   : > { %v681_v27 = vpack.c.bf16 %v537_v19, %v533_v18  ;;  %v686_v29 = vpack.c.bf16 %v546_v24, %v542_v23  ;;  %v916_v18 = vsub.s32 3, %v903_v13 }
  0xd7   : > { %757 = vmatpush1.bf16.msra.mxu0 %v661_v30  ;;  %v541_v30 = vld [vmem:[%s1606_s28 + $0x700] sm:$0xff] }
  0xd8   : > { %843 = vmatpush1.bf16.msra.mxu1 %v663_v32  ;;  %758 = vmatprep.subr.bf16.mxu0 %v666_v33  ;;  %v543_v32 = vld [vmem:[%s1606_s28 + $0x710] sm:$0xff]  ;;  %v688_v33 = vpack.c.bf16 %v548_v26, %v544_v25  ;;  %v685_v39 = vpack.c.bf16 %v545_v31, %v541_v30 }
  0xd9   : > { %844 = vmatprep.subr.bf16.mxu1 %v668_v37  ;;  %v552_v37 = vld [vmem:[%s1606_s28 + $0x758] sm:$0xff]  ;;  %v687_v40 = vpack.c.bf16 %v547_v34, %v543_v32 }
  0xdb   : > { %759 = vmatpush1.bf16.msra.mxu0 %v665_v43  ;;  %v553_v43 = vld [vmem:[%s1606_s28 + $0x760] sm:$0xff] }
  0xdc   : > { %845 = vmatpush1.bf16.msra.mxu1 %v667_v44  ;;  %760 = vmatprep.subr.bf16.mxu0 %v670_v45  ;;  %v551_v44 = vld [vmem:[%s1606_s28 + $0x750] sm:$0xff]  ;;  %v692_v45 = vpack.c.bf16 %v556_v38, %v552_v37  ;;  %v689_v51 = vpack.c.bf16 %v553_v43, %v549_v42 }
  0xdd   : > { %846 = vmatprep.subr.bf16.mxu1 %v672_v49  ;;  %v560_v49 = vld [vmem:[%s1606_s28 + $0x798] sm:$0xff]  ;;  %v691_v52 = vpack.c.bf16 %v555_v46, %v551_v44 }
  0xdf   : > { %761 = vmatpush1.bf16.msra.mxu0 %v669_v55  ;;  %v561_v55 = vld [vmem:[%s1606_s28 + $0x7a0] sm:$0xff] }
  0xe0   : > { %847 = vmatpush1.bf16.msra.mxu1 %v671_v56  ;;  %762 = vmatprep.subr.bf16.mxu0 %v674_v57  ;;  %v559_v56 = vld [vmem:[%s1606_s28 + $0x790] sm:$0xff]  ;;  %v696_v57 = vpack.c.bf16 %v564_v50, %v560_v49  ;;  %v693_v63 = vpack.c.bf16 %v561_v55, %v557_v54 }
  0xe1   : > { %848 = vmatprep.subr.bf16.mxu1 %v676_v61  ;;  %v568_v61 = vld [vmem:[%s1606_s28 + $0x7d8] sm:$0xff]  ;;  %v695_v0 = vpack.c.bf16 %v563_v58, %v559_v56 }
  0xe3   : > { %763 = vmatpush1.bf16.msra.mxu0 %v673_v3  ;;  %v569_v3 = vld [vmem:[%s1606_s28 + $0x7e0] sm:$0xff] }
  0xe4   : > { %849 = vmatpush1.bf16.msra.mxu1 %v675_v4  ;;  %764 = vmatprep.subr.bf16.mxu0 %v678_v5  ;;  %v700_v4 = vpack.c.bf16 %v572_v62, %v568_v61  ;;  %v567_v5 = vld [vmem:[%s1606_s28 + $0x7d0] sm:$0xff]  ;;  %v697_v7 = vpack.c.bf16 %v569_v3, %v565_v2 }
  0xe5   : > { %850 = vmatprep.subr.bf16.mxu1 %v680_v9  ;;  %v311_v9 = vld [vmem:[#allocation3 + $0x30] sm:$0xff]  ;;  %v699_v10 = vpack.c.bf16 %v571_v6, %v567_v5 }
  0xe6   : > { %v315_v11 = vpack.c.bf16 %v311_v9, %v307_v8 }
  0xe7   : > { %765 = vmatpush1.bf16.msra.mxu0 %v677_v15  ;;  %v900_v15 = vld [vmem:[%s250_s8] sm:$0xf] }
  0xe8   : > { %851 = vmatpush1.bf16.msra.mxu1 %v679_v16  ;;  %766 = vmatprep.subr.bf16.mxu0 %v682_v17  ;;  %v912_v16 = vsub.s32 2, %v903_v13  ;;  %v908_v17 = vsub.s32 1, %v903_v13  ;;  %v905_v19 = vrot.slane %v900_v15, %v904_v14  ;;  %v917_v22 = vrot.slane %v900_v15, %v916_v18 }
  0xe9   : > { %852 = vmatprep.subr.bf16.mxu1 %v684_v21 }
  0xea   : > { %v913_v20 = vrot.slane %v900_v15, %v912_v16  ;;  %v909_v21 = vrot.slane %v900_v15, %v908_v17 }
  0xeb   : > { %767 = vmatpush1.bf16.msra.mxu0 %v681_v27 }
  0xec   : > { %853 = vmatpush1.bf16.msra.mxu1 %v683_v28  ;;  %768 = vmatprep.subr.bf16.mxu0 %v686_v29 }
  0xed   : > { %854 = vmatprep.subr.bf16.mxu1 %v688_v33 }
  0xef   : > { %769 = vmatpush1.bf16.msra.mxu0 %v685_v39 }
  0xf0   : > { %855 = vmatpush1.bf16.msra.mxu1 %v687_v40  ;;  %770 = vmatprep.subr.bf16.mxu0 %v690_v41 }
  0xf1   : > { %856 = vmatprep.subr.bf16.mxu1 %v692_v45 }
  0xf3   : > { %771 = vmatpush1.bf16.msra.mxu0 %v689_v51 }
  0xf4   : > { %857 = vmatpush1.bf16.msra.mxu1 %v691_v52  ;;  %772 = vmatprep.subr.bf16.mxu0 %v694_v53 }
  0xf5   : > { %858 = vmatprep.subr.bf16.mxu1 %v696_v57 }
  0xf7   : > { %773 = vmatpush1.bf16.msra.mxu0 %v693_v63 }
  0xf8   : > { %859 = vmatpush1.bf16.msra.mxu1 %v695_v0  ;;  %774 = vmatprep.subr.bf16.mxu0 %v698_v1 }
  0xf9   : > { %860 = vmatprep.subr.bf16.mxu1 %v700_v4 }
  0xfb   : > { %775 = vmatpush1.bf16.msra.mxu0 %v697_v7 }
  0xfc   : > { %861 = vmatpush1.bf16.msra.mxu1 %v699_v10 }
  0xfe   : > { %777 = vmatmul.mubr.bf16.vlgmr.msra.gmra.mrb[0].mxu0 %v315_v11 }
  0xff   : > { %863 = vmatmul.mubr.bf16.vlgmr.msra.gmra.mrb[0].mxu1 %v315_v11 }
 0x1d1   : > { %v778_v23 = vpop.f32.mrb[0].mxu0 }
 0x1d2   : > { %v922_v24 = vadd.f32 %v905_v19, %v778_v23  ;;  %v864_v25 = vpop.f32.mrb[0].mxu1  ;;  %v780_v26 = vpop.f32.mrb[1].mxu0 }
 0x1d3   : > { %v924_v27 = vadd.f32 %v913_v20, %v864_v25  ;;  %v923_v28 = vadd.f32 %v909_v21, %v780_v26  ;;  %v866_v29 = vpop.f32.mrb[1].mxu1  ;;  %v782_v30 = vpop.f32.mrb[2].mxu0 }
 0x1d4   : > { %930 = vst [vmem:[%s277_s19] sm:$0xff] %v922_v24  ;;  %v925_v31 = vadd.f32 %v917_v22, %v866_v29  ;;  %v926_v32 = vadd.f32 %v905_v19, %v782_v30  ;;  %v868_v33 = vpop.f32.mrb[2].mxu1  ;;  %v784_v34 = vpop.f32.mrb[3].mxu0 }
 0x1d5   : > { %932 = vst [vmem:[%s277_s19 + $0x10] sm:$0xff] %v924_v27  ;;  %931 = vst [vmem:[%s277_s19 + $0x8] sm:$0xff] %v923_v28  ;;  %v928_v35 = vadd.f32 %v913_v20, %v868_v33  ;;  %v927_v36 = vadd.f32 %v909_v21, %v784_v34  ;;  %v870_v37 = vpop.f32.mrb[3].mxu1 }
 0x1d6   : > { %933 = vst [vmem:[%s277_s19 + $0x18] sm:$0xff] %v925_v31  ;;  %934 = vst [vmem:[%s277_s19 + $0x20] sm:$0xff] %v926_v32  ;;  %v929_v38 = vadd.f32 %v917_v22, %v870_v37 }
 0x1d7   : > { %936 = vst [vmem:[%s277_s19 + $0x30] sm:$0xff] %v928_v35  ;;  %935 = vst [vmem:[%s277_s19 + $0x28] sm:$0xff] %v927_v36 }
 0x1d8   : > { %937 = vst [vmem:[%s277_s19 + $0x38] sm:$0xff] %v929_v38 }
 0x1d9   : > { %1299 = shalt.err (!%p1296_p2)
}
 0x1da   : > { %s1300_s7 = scalar_lea.hbm %s1876_s23, 1024  ;;  %s1304_s28 = scalar_lea.hbm %s1927_s3, 3072 }
 0x1db   : > { %p1301_p5 = scmp.ne.s32.totalorder %s1876_s23, %s1300_s7  ;;  %p1305_p4 = scmp.lt.u32.totalorder %s1876_s23, %s1927_s3 }
 0x1dc   : > { %p1306_p7 = scmp.lt.u32.totalorder %s1304_s28, %s1300_s7  ;;  %p1308_p9 = scmp.lt.u32.totalorder %s1300_s7, %s1876_s23 }
 0x1dd   : > { %p1302_p11 = pnand %p1301_p5, %p1951_p12 }
 0x1de   : > { %p1307_p0 = por %p1306_p7, %p1305_p4 }
 0x1df   : > { %p1303_p8 = pneg %p1302_p11 }
 0x1e0   : > { %p1309_p13 = por %p1308_p9, %p1307_p0 }
 0x1e2   : > { %p1310_p6 = pnand %p1309_p13, %p1303_p8 }
 0x1e4   : > { %1313 = shalt.err (!%p1310_p6)
}
 0x1e5   : > { %s1381_s10 = smov 512   ;;  %s1382_s19 = smov 1536  }
 0x1e6   : > { %s1383_s22 = smov 32  }
 0x1e7   : > { %1122 = dma.vmem_to_hbm [thread:$0]  (%p1951_p12), %s1871_s11, 1024, %s1876_s23, %s939_s5, %s1381_s10, %s1382_s19, %s1383_s22  }
 0x1e8 PF: > { %p1142_p3 = scmp.ge.s32.totalorder %s1372_s17, 2  ;;  %s970_s15 = sand.u32 1, %s1352_s12  }
 0x1e9   : > { %p1952_p1 = scmp.ne.s32.totalorder %s1941_s4, 0  ;;  %s971_s9 = scalar_lea.sflag [#allocation5], %s970_s15 }
 0x1eb   : > { %p1136_p10 = pnand %p1142_p3, %p1952_p1 }
 0x1ed   : > { %1347 = dma.done.wait (!%p1136_p10), %s971_s9, 1024  }
 0x1ee   : > { %1349 = vsyncadd (!%p1136_p10), %s971_s9, 4294966272  ;;  %s20_s17 = sadd.s32 1, %s1372_s17   ;;  %s1953_s12 = smov %s1356_s13 }
 0x1ef   : > { %p17_p2 = scmp.ge.s32.totalorder %s20_s17, 5   ;;  %s1954_s13 = smov %s1360_s14 }
 0x1f0   : > { %s1955_s14 = smov %s1454_s24  ;;  %s1956_s15 = smov %s1368_s16 }
 0x1f1   : > { %s1957_s16 = smov %s1959_s18  ;;  %19 = sbr.rel (!%p17_p2) target bundleno = 9 (0x9), region = 102 }
 0x1f8   :  { %976 = vsyncpa [#allocation4], 1 }
 0x1f9   :  { %978 = vsyncpa [#allocation4 + $0x1], 1 }
 0x1fa   :  { %979 = vsyncpa [#allocation7], 1 }
 0x1fb   :  { %981 = vsyncpa [#allocation7 + $0x1], 1 }
 0x1fc   :  { %982 = vsyncpa [#allocation5], 1 }
 0x1fd   :  { %984 = vsyncpa [#allocation5 + $0x1], 1 }

</bundles_post_ra>
